<compile_context>
chip_gen: v7x
topology: tpu7x:2x2x1
jax: 0.10.0
libtpu: 0.0.40
codegen_flags: <defaults>
</compile_context>

<pallas_src>
import jax
import jax.numpy as jnp
from jax import lax
from jax.experimental import pallas as pl
from jax.experimental.pallas import tpu as pltpu

EPS = 1e-5


def _aspin_kernel(xr_ref, xi_ref, p_ref, or_ref, oi_ref):
    """Instance-norm over the lane axis, applied independently to the real and
    imaginary planes of one tile of rows.  p_ref packs (gamma_r, beta_r,
    gamma_i, beta_i) per row."""
    p = p_ref[...]  # (TR, 4) f32

    def inorm(x, g, b):
        # x: (TR, HW) f32, g/b: (TR, 1) f32.
        # Two-pass statistics == torch InstanceNorm2d (biased variance,
        # eps inside the rsqrt).  Kept two-pass for numerical robustness.
        mean = jnp.mean(x, axis=-1, keepdims=True)
        xc = x - mean
        var = jnp.mean(xc * xc, axis=-1, keepdims=True)
        scale = lax.rsqrt(var + EPS) * g          # fold gamma into (TR, 1) scale
        return xc * scale + b

    or_ref[...] = inorm(xr_ref[...], p[:, 0:1], p[:, 1:2])
    oi_ref[...] = inorm(xi_ref[...], p[:, 2:3], p[:, 3:4])


def _choose_tile_rows(nc, hw, data_budget_bytes):
    """Largest row tile that (a) is a multiple of 8, (b) divides nc, (c) keeps
    the double-buffered (2 in + 2 out) f32 blocks under the budget, and
    (d) leaves >= 2 grid steps so both TensorCores of a megacore part (v7x)
    get work."""
    bytes_per_row = 8 * hw * 4        # (2 in + 2 out) blocks x 2 buffers x 4 B
    cap = max(8, data_budget_bytes // bytes_per_row)
    best = 8
    for r in range(8, nc + 1, 8):
        if nc % r == 0 and r <= cap and nc // r >= 2:
            best = r
    return best


def complex_aspin(x, gamma_r, beta_r, gamma_i, beta_i, *,
                  data_budget_bytes=16 << 20):
    """x: complex64 (N, C, H, W); gamma/beta: float32 (C,).  Returns complex64
    (N, C, H, W) matching torch complex_ASPIN.forward."""
    N, C, H, W = x.shape
    NC, HW = N * C, H * W
    assert NC % 8 == 0 and HW % 128 == 0, "pick friendly small shapes"

    xr = jnp.real(x).astype(jnp.float32).reshape(NC, HW)
    xi = jnp.imag(x).astype(jnp.float32).reshape(NC, HW)

    # Pack the four per-channel affine params into one (NC, 4) row-parameter
    # array: column 0=gamma_r, 1=beta_r, 2=gamma_i, 3=beta_i.
    def rows(p):
        return jnp.tile(p.astype(jnp.float32), N)  # row n*C + c -> p[c]

    params = jnp.stack(
        [rows(gamma_r), rows(beta_r), rows(gamma_i), rows(beta_i)], axis=-1)

    tile_rows = _choose_tile_rows(NC, HW, data_budget_bytes)
    grid = (NC // tile_rows,)

    data_spec = pl.BlockSpec((tile_rows, HW), lambda i: (i, 0))
    par_spec = pl.BlockSpec((tile_rows, 4), lambda i: (i, 0))

    out_r, out_i = pl.pallas_call(
        _aspin_kernel,
        out_shape=(jax.ShapeDtypeStruct((NC, HW), jnp.float32),
                   jax.ShapeDtypeStruct((NC, HW), jnp.float32)),
        grid_spec=pltpu.PrefetchScalarGridSpec(
            num_scalar_prefetch=0,
            grid=grid,
            in_specs=[data_spec, data_spec, par_spec],
            out_specs=[data_spec, data_spec],
        ),
        compiler_params=pltpu.CompilerParams(
            dimension_semantics=("parallel",),
            vmem_limit_bytes=32 << 20,            # safe on v5e/v6e/v7x
            allow_input_fusion=[True, True, False],
        ),
    )(xr, xi, params)

    out_r = out_r.reshape(N, C, H, W)
    out_i = out_i.reshape(N, C, H, W)
    return lax.complex(out_r, out_i)


def _reference(x, gamma_r, beta_r, gamma_i, beta_i):
    """Pure-JAX reference matching torch InstanceNorm2d semantics."""
    def inorm(p, g, b):
        mean = jnp.mean(p, axis=(2, 3), keepdims=True)
        var = jnp.mean((p - mean) ** 2, axis=(2, 3), keepdims=True)
        y = (p - mean) * lax.rsqrt(var + EPS)
        return y * g[None, :, None, None] + b[None, :, None, None]
    return lax.complex(inorm(jnp.real(x), gamma_r, beta_r),
                       inorm(jnp.imag(x), gamma_i, beta_i))


if __name__ == "__main__":
    key = jax.random.PRNGKey(0)
    k1, k2, k3, k4, k5, k6 = jax.random.split(key, 6)

    # Module shapes: nf = 16 channels; small spatial/batch.
    N, C, H, W = 2, 16, 16, 16
    xr = jax.random.normal(k1, (N, C, H, W), dtype=jnp.float32)
    xi = jax.random.normal(k2, (N, C, H, W), dtype=jnp.float32)
    x = lax.complex(xr, xi)

    # Deterministic affine params (perturbed from the ones/zeros default so the
    # affine path is actually exercised).
    gamma_r = 1.0 + 0.1 * jax.random.normal(k3, (C,), dtype=jnp.float32)
    beta_r = 0.1 * jax.random.normal(k4, (C,), dtype=jnp.float32)
    gamma_i = 1.0 + 0.1 * jax.random.normal(k5, (C,), dtype=jnp.float32)
    beta_i = 0.1 * jax.random.normal(k6, (C,), dtype=jnp.float32)

    out = complex_aspin(x, gamma_r, beta_r, gamma_i, beta_i)
    out = jax.block_until_ready(out)

    ref = _reference(x, gamma_r, beta_r, gamma_i, beta_i)
    assert out.shape == (N, C, H, W) and out.dtype == jnp.complex64
    assert jnp.allclose(jnp.real(out), jnp.real(ref), atol=3e-5, rtol=1e-5)
    assert jnp.allclose(jnp.imag(out), jnp.imag(ref), atol=3e-5, rtol=1e-5)

    print("KERNEL_OK")
</pallas_src>

<mosaic_0001>
module attributes {stable_mosaic.version = 11 : i64} {
  func.func @_aspin_kernel(%arg0: i32, %arg1: memref<16x256xf32, #tpu.memory_space<vmem>>, %arg2: memref<16x256xf32, #tpu.memory_space<vmem>>, %arg3: memref<16x4xf32, #tpu.memory_space<vmem>>, %arg4: memref<16x256xf32, #tpu.memory_space<vmem>>, %arg5: memref<16x256xf32, #tpu.memory_space<vmem>>) attributes {dimension_semantics = [#tpu.dimension_semantics<parallel>], iteration_bounds = array<i64: 2>, scalar_prefetch = 0 : i64, scratch_operands = 0 : i64, tpu.core_type = #tpu.core_type<tc>, window_params = [{transform_indices = @transform_0, window_bounds = array<i64: 16, 256>}, {transform_indices = @transform_1, window_bounds = array<i64: 16, 256>}, {transform_indices = @transform_2, window_bounds = array<i64: 16, 4>}, {transform_indices = @transform_3, window_bounds = array<i64: 16, 256>}, {transform_indices = @transform_4, window_bounds = array<i64: 16, 256>}]} {
    %c0 = arith.constant 0 : index
    %c0_0 = arith.constant 0 : index
    %0 = vector.load %arg3[%c0, %c0_0] : memref<16x4xf32, #tpu.memory_space<vmem>>, vector<16x4xf32>
    %c0_1 = arith.constant 0 : index
    %c0_2 = arith.constant 0 : index
    %1 = vector.load %arg1[%c0_1, %c0_2] : memref<16x256xf32, #tpu.memory_space<vmem>>, vector<16x256xf32>
    %2 = vector.extract_strided_slice %0 {offsets = [0, 0], sizes = [16, 1], strides = [1, 1]} : vector<16x4xf32> to vector<16x1xf32>
    %3 = vector.extract_strided_slice %0 {offsets = [0, 1], sizes = [16, 1], strides = [1, 1]} : vector<16x4xf32> to vector<16x1xf32>
    %cst = arith.constant dense<0.000000e+00> : vector<16xf32>
    %4 = vector.multi_reduction <add>, %1, %cst [1] : vector<16x256xf32> to vector<16xf32>
    %5 = vector.shape_cast %4 : vector<16xf32> to vector<16x1xf32>
    %cst_3 = arith.constant 2.560000e+02 : f32
    %6 = vector.broadcast %cst_3 : f32 to vector<16x1xf32>
    %7 = arith.divf %5, %6 : vector<16x1xf32>
    %8 = vector.broadcast %7 : vector<16x1xf32> to vector<16x256xf32>
    %9 = arith.subf %1, %8 : vector<16x256xf32>
    %10 = arith.mulf %9, %9 : vector<16x256xf32>
    %cst_4 = arith.constant dense<0.000000e+00> : vector<16xf32>
    %11 = vector.multi_reduction <add>, %10, %cst_4 [1] : vector<16x256xf32> to vector<16xf32>
    %12 = vector.shape_cast %11 : vector<16xf32> to vector<16x1xf32>
    %cst_5 = arith.constant 2.560000e+02 : f32
    %13 = vector.broadcast %cst_5 : f32 to vector<16x1xf32>
    %14 = arith.divf %12, %13 : vector<16x1xf32>
    %cst_6 = arith.constant 9.99999974E-6 : f32
    %15 = vector.broadcast %cst_6 : f32 to vector<16x1xf32>
    %16 = arith.addf %14, %15 : vector<16x1xf32>
    %17 = math.rsqrt %16 : vector<16x1xf32>
    %18 = arith.mulf %17, %2 : vector<16x1xf32>
    %19 = vector.broadcast %18 : vector<16x1xf32> to vector<16x256xf32>
    %20 = arith.mulf %9, %19 : vector<16x256xf32>
    %21 = vector.broadcast %3 : vector<16x1xf32> to vector<16x256xf32>
    %22 = arith.addf %20, %21 : vector<16x256xf32>
    %c0_7 = arith.constant 0 : index
    %c0_8 = arith.constant 0 : index
    %23 = vector.load %arg4[%c0_7, %c0_8] : memref<16x256xf32, #tpu.memory_space<vmem>>, vector<16x256xf32>
    tpu.vector_store %arg4[%c0_7, %c0_8], %22 {strides = array<i32>} : memref<16x256xf32, #tpu.memory_space<vmem>>, vector<16x256xf32>,
    %c0_9 = arith.constant 0 : index
    %c0_10 = arith.constant 0 : index
    %24 = vector.load %arg2[%c0_9, %c0_10] : memref<16x256xf32, #tpu.memory_space<vmem>>, vector<16x256xf32>
    %25 = vector.extract_strided_slice %0 {offsets = [0, 2], sizes = [16, 1], strides = [1, 1]} : vector<16x4xf32> to vector<16x1xf32>
    %26 = vector.extract_strided_slice %0 {offsets = [0, 3], sizes = [16, 1], strides = [1, 1]} : vector<16x4xf32> to vector<16x1xf32>
    %cst_11 = arith.constant dense<0.000000e+00> : vector<16xf32>
    %27 = vector.multi_reduction <add>, %24, %cst_11 [1] : vector<16x256xf32> to vector<16xf32>
    %28 = vector.shape_cast %27 : vector<16xf32> to vector<16x1xf32>
    %cst_12 = arith.constant 2.560000e+02 : f32
    %29 = vector.broadcast %cst_12 : f32 to vector<16x1xf32>
    %30 = arith.divf %28, %29 : vector<16x1xf32>
    %31 = vector.broadcast %30 : vector<16x1xf32> to vector<16x256xf32>
    %32 = arith.subf %24, %31 : vector<16x256xf32>
    %33 = arith.mulf %32, %32 : vector<16x256xf32>
    %cst_13 = arith.constant dense<0.000000e+00> : vector<16xf32>
    %34 = vector.multi_reduction <add>, %33, %cst_13 [1] : vector<16x256xf32> to vector<16xf32>
    %35 = vector.shape_cast %34 : vector<16xf32> to vector<16x1xf32>
    %cst_14 = arith.constant 2.560000e+02 : f32
    %36 = vector.broadcast %cst_14 : f32 to vector<16x1xf32>
    %37 = arith.divf %35, %36 : vector<16x1xf32>
    %cst_15 = arith.constant 9.99999974E-6 : f32
    %38 = vector.broadcast %cst_15 : f32 to vector<16x1xf32>
    %39 = arith.addf %37, %38 : vector<16x1xf32>
    %40 = math.rsqrt %39 : vector<16x1xf32>
    %41 = arith.mulf %40, %25 : vector<16x1xf32>
    %42 = vector.broadcast %41 : vector<16x1xf32> to vector<16x256xf32>
    %43 = arith.mulf %32, %42 : vector<16x256xf32>
    %44 = vector.broadcast %26 : vector<16x1xf32> to vector<16x256xf32>
    %45 = arith.addf %43, %44 : vector<16x256xf32>
    %c0_16 = arith.constant 0 : index
    %c0_17 = arith.constant 0 : index
    %46 = vector.load %arg5[%c0_16, %c0_17] : memref<16x256xf32, #tpu.memory_space<vmem>>, vector<16x256xf32>
    tpu.vector_store %arg5[%c0_16, %c0_17], %45 {strides = array<i32>} : memref<16x256xf32, #tpu.memory_space<vmem>>, vector<16x256xf32>,
    return
  }
  func.func @transform_0(%arg0: i32) -> (i32, i32) {
    %c0_i32 = arith.constant 0 : i32
    %c0_i32_0 = arith.constant 0 : i32
    return %arg0, %c0_i32 : i32, i32
  }
  func.func @transform_1(%arg0: i32) -> (i32, i32) {
    %c0_i32 = arith.constant 0 : i32
    %c0_i32_0 = arith.constant 0 : i32
    return %arg0, %c0_i32 : i32, i32
  }
  func.func @transform_2(%arg0: i32) -> (i32, i32) {
    %c0_i32 = arith.constant 0 : i32
    %c0_i32_0 = arith.constant 0 : i32
    return %arg0, %c0_i32 : i32, i32
  }
  func.func @transform_3(%arg0: i32) -> (i32, i32) {
    %c0_i32 = arith.constant 0 : i32
    %c0_i32_0 = arith.constant 0 : i32
    return %arg0, %c0_i32 : i32, i32
  }
  func.func @transform_4(%arg0: i32) -> (i32, i32) {
    %c0_i32 = arith.constant 0 : i32
    %c0_i32_0 = arith.constant 0 : i32
    return %arg0, %c0_i32 : i32, i32
  }
}

</mosaic_0001>

<bundles_post_ra>
// kernel: tpu_custom_call.1
= control target key start
LH: loop header
LB: loop body
LE: loop exit
PB: predicated region body
PF: predicated region fallthrough
CT: control target
= control target key end

     0   :  { %10 = vsyncpa [#allocation3], 0  ;;  %s1235_s0 = inlined_call_operand.hbm [shape: f32[32,256], index: 0, kind: input, shape index: {}]   ;;  %s1236_s1 = inlined_call_operand.hbm [shape: f32[32,256], index: 1, kind: input, shape index: {}]   ;;  %s1237_s2 = inlined_call_operand.vmem [shape: f32[32,4], index: 2, kind: input, shape index: {}]   ;;  %s1238_s3 = inlined_call_operand.hbm [shape: f32[32,256], index: 3, kind: output, shape index: {0}]   ;;  %s1239_s4 = inlined_call_operand.hbm [shape: f32[32,256], index: 4, kind: output, shape index: {1}]  }
   0x1   :  { %12 = vsyncpa [#allocation3 + $0x1], 0 }
   0x2   :  { %13 = vsyncpa [#allocation6], 0 }
   0x3   :  { %15 = vsyncpa [#allocation6 + $0x1], 0 }
   0x4   :  { %16 = vsyncpa [#allocation4], 0 }
   0x5   :  { %18 = vsyncpa [#allocation4 + $0x1], 0 }
   0x6   :  { %19 = vsyncpa [#allocation9], 0 }
   0x7   :  { %21 = vsyncpa [#allocation9 + $0x1], 0  ;;  %s921_s15 = smov 0   ;;  %s923_s16 = smov 0  }
   0x8   :  { %s925_s17 = smov 0   ;;  %s927_s18 = smov 0  }
   0x9 LB: > { %s942_s19 = sadd.s32 4294967295, %s882_s18   ;;  %s605_s20 = sadd.s32 4294967294, %s882_s18   ;;  %s882_s18 = sphi %s927_s18, %s1255_s18   ;;  %s878_s17 = sphi %s925_s17, %s1254_s17   ;;  %s874_s16 = sphi %s923_s16, %s1253_s16   ;;  %s870_s15 = sphi %s921_s15, %s1252_s15  }
   0xa   : > { %s946_s21 = sadd.s32 1, %s882_s18   ;;  %s34_s22 = sadd.s32 1, %s878_s17 }
   0xb   : > { %s31_s23 = ssub.s32 %s882_s18, %s946_s21  ;;  %p41_p0 = scmp.ne.s32.totalorder %s878_s17, %s874_s16 }
   0xc   : > { %p32_p1 = scmp.eq.s32.totalorder %s31_s23, 0  ;;  %p42_p2 = scmp.eq.s32.totalorder %s882_s18, 0 }
   0xd   : > { %p47_p3 = scmp.ne.s32.totalorder %s874_s16, %s870_s15  ;;  %p48_p4 = scmp.eq.s32.totalorder %s942_s19, 0 }
   0xe   : > { %s958_s24 = scalar_select %p32_p1, %s878_s17, %s34_s22  }
   0xf   : > { %p960_p5 = por %p42_p2, %p41_p0  ;;  %p964_p6 = por %p48_p4, %p47_p3 }
  0x10   : > { %p123_p7 = scmp.eq.s32.totalorder %s942_s19, 1  ;;  %p129_p8 = scmp.eq.s32.totalorder %s605_s20, 1 }
  0x11   : > { %s1243_s26 = scalar_select %p964_p6, 1, 0 }
  0x12   : > { %p663_p10 = scmp.lt.s32.totalorder %s882_s18, 2  ;;  %p971_p11 = por %p123_p7, %p41_p0 }
  0x13   : > { %p975_p12 = por %p129_p8, %p47_p3  ;;  %s980_s29 = sand.u32 1, %s878_s17  }
  0x14   : > { %s1244_s27 = scalar_select %p971_p11, 1, 0 }
  0x15   : > { %s1245_s28 = scalar_select %p975_p12, 1, 0 }
  0x16   : > { %s634_s30 = sshll.u32 %s882_s18, 9  ;;  %s608_s5 = sshll.u32 %s980_s29, 5 }
  0x17   : > { %s989_s8 = scalar_lea.hbm %s1235_s0, %s634_s30  ;;  %s179_s9 = scalar_lea.vmem [#allocation2], %s608_s5 }
  0x18   : > { %s187_s10 = sshll.u32 %s179_s9, 4  ;;  %p995_p13 = pnand %p663_p10, %p960_p5  ;;  %s999_s10 = int_to_ptr.vmem [resolvable:$true] %s187_s10 }
  0x19   : > { %s176_s12 = scalar_lea.sflag [#allocation3], %s980_s29  ;;  %s720_s13 = scalar_lea.hbm %s989_s8, 512 }
  0x1a   : > { %p721_p0 = scmp.ne.s32.totalorder %s989_s8, %s720_s13  ;;  %p722_p1 = pneg %p995_p13 }
  0x1b   : > { %s725_s22 = scalar_lea.hbm %s1235_s0, 1024  ;;  %p726_p4 = scmp.lt.u32.totalorder %s989_s8, %s1235_s0 }
  0x1c   : > { %p723_p2 = pnand %p722_p1, %p721_p0  ;;  %p727_p5 = scmp.lt.u32.totalorder %s725_s22, %s720_s13 }
  0x1d   : > { %p729_p8 = scmp.lt.u32.totalorder %s720_s13, %s989_s8 }
  0x1e   : > { %p724_p3 = pneg %p723_p2  ;;  %p728_p7 = por %p727_p5, %p726_p4 }
  0x20   : > { %p730_p10 = por %p729_p8, %p728_p7 }
  0x22   : > { %p731_p9 = pnand %p730_p10, %p724_p3 }
  0x24   : > { %734 = shalt.err (!%p731_p9)
}
  0x25   : > { %s735_s6 = scalar_lea.vmem %s999_s10, 512  ;;  %s884_s7 = smov [#allocation2]  }
  0x26   : > { %p736_p0 = scmp.ne.s32.totalorder %s999_s10, %s735_s6  ;;  %s740_s9 = sshll.u32 %s884_s7, 4  ;;  %s741_s9 = int_to_ptr.vmem [resolvable:$false] %s740_s9 }
  0x27   : > { %s742_s14 = scalar_lea.vmem %s741_s9, 1024  ;;  %p743_p11 = scmp.lt.s32.totalorder %s999_s10, %s741_s9 }
  0x28   : > { %p738_p2 = pnand %p736_p0, %p722_p1  ;;  %p744_p4 = scmp.lt.s32.totalorder %s742_s14, %s735_s6 }
  0x2a   : > { %p739_p12 = pneg %p738_p2  ;;  %p745_p5 = por %p744_p4, %p743_p11 }
  0x2c   : > { %p746_p7 = pnand %p745_p5, %p739_p12 }
  0x2e   : > { %749 = shalt.err (!%p746_p7)
}
  0x2f   : > { %s885_s13 = smov 256   ;;  %s886_s20 = smov 16  }
  0x30   : > { %652 = dma.hbm_to_vmem [thread:$0]  (!%p995_p13), %s989_s8, 512, %s999_s10, %s176_s12, %s885_s13, %s885_s13, %s886_s20  }
  0x31   : > { %p616_p9 = scmp.ge.s32.totalorder %s882_s18, 1  ;;  %p226_p11 = scmp.lt.s32.totalorder %s882_s18, 3 }
  0x32   : > { %s1043_s6 = scalar_lea.hbm %s1236_s1, %s634_s30  ;;  %s201_s7 = scalar_lea.vmem [#allocation5], %s608_s5 }
  0x33   : > { %p1034_p12 = pnand %p616_p9, %p226_p11  ;;  %s209_s9 = sshll.u32 %s201_s7, 4  ;;  %s1047_s9 = int_to_ptr.vmem [resolvable:$true] %s209_s9 }
  0x34   : > { %s198_s8 = scalar_lea.sflag [#allocation6], %s980_s29  ;;  %s750_s10 = scalar_lea.hbm %s1043_s6, 512 }
  0x35   : > { %p751_p3 = scmp.ne.s32.totalorder %s1043_s6, %s750_s10  ;;  %s755_s30 = scalar_lea.hbm %s1236_s1, 1024 }
  0x36   : > { %p756_p0 = scmp.lt.u32.totalorder %s1043_s6, %s1236_s1  ;;  %p757_p2 = scmp.lt.u32.totalorder %s755_s30, %s750_s10 }
  0x37   : > { %p753_p8 = pnand %p751_p3, %p722_p1  ;;  %p759_p5 = scmp.lt.u32.totalorder %s750_s10, %s1043_s6 }
  0x38   : > { %p758_p4 = por %p757_p2, %p756_p0 }
  0x39   : > { %p754_p10 = pneg %p753_p8 }
  0x3a   : > { %p760_p7 = por %p759_p5, %p758_p4 }
  0x3c   : > { %p761_p9 = pnand %p760_p7, %p754_p10 }
  0x3e   : > { %764 = shalt.err (!%p761_p9)
}
  0x3f   : > { %s765_s5 = scalar_lea.vmem %s1047_s9, 512  ;;  %s887_s7 = smov [#allocation5]  }
  0x40   : > { %p766_p11 = scmp.ne.s32.totalorder %s1047_s9, %s765_s5  ;;  %s770_s12 = sshll.u32 %s887_s7, 4  ;;  %s771_s12 = int_to_ptr.vmem [resolvable:$false] %s770_s12 }
  0x41   : > { %s772_s14 = scalar_lea.vmem %s771_s12, 1024  ;;  %p773_p6 = scmp.lt.s32.totalorder %s1047_s9, %s771_s12 }
  0x42   : > { %p768_p3 = pnand %p766_p11, %p722_p1  ;;  %p774_p0 = scmp.lt.s32.totalorder %s772_s14, %s765_s5 }
  0x44   : > { %p769_p8 = pneg %p768_p3  ;;  %p775_p2 = por %p774_p0, %p773_p6 }
  0x46   : > { %p776_p4 = pnand %p775_p2, %p769_p8 }
  0x48   : > { %779 = shalt.err (!%p776_p4)
}
  0x49   : > { %655 = dma.hbm_to_vmem [thread:$0]  (!%p995_p13), %s1043_s6, 512, %s1047_s9, %s198_s8, %s885_s13, %s885_s13, %s886_s20  }
  0x4a   : > { %230 = sbr.rel (%p1034_p12) target bundleno = 573 (0x23d), region = 32  ;;  %s1081_s10 = sand.u32 (!%p1034_p12), 1, %s874_s16  }
  0x4b   : > { %s1084_s30 = sshll.u32 (!%p1034_p12), %s1081_s10, 5  ;;  %s233_s11 = scalar_lea.sflag (!%p1034_p12), [#allocation3], %s1081_s10 }
  0x4c   : > { %s236_s23 = scalar_lea.vmem (!%p1034_p12), [#allocation2], %s1084_s30  ;;  %p1248_p6 = scmp.ne.s32.totalorder (!%p1034_p12), %s1243_s26, 0 }
  0x51   : > { %853 = dma.done.wait (%p1248_p6), %s233_s11, 512  }
  0x52   : > { %855 = vsyncadd (%p1248_p6), %s233_s11, 4294966784  ;;  %s242_s29 = scalar_lea.sflag [#allocation6], %s1081_s10  ;;  %s245_s13 = scalar_lea.vmem [#allocation5], %s1084_s30 }
  0x53   : > { %857 = dma.done.wait (%p1248_p6), %s242_s29, 512  }
  0x54   : > { %859 = vsyncadd (%p1248_p6), %s242_s29, 4294966784  ;;  %v297_v0 = vld [vmem:[%s236_s23] sm:$0xff]  ;;  %v298_v1 = vld [vmem:[%s236_s23 + $0x8] sm:$0xff]  ;;  %s621_s26 = sshll.u32 %s942_s19, 1  ;;  %v888_v40 = vmov 1   ;;  %v889_v43 = vmov 0  }
  0x55   : > { %v299_v2 = vld [vmem:[%s236_s23 + $0x10] sm:$0xff]  ;;  %v301_v3 = vadd.f32 %v298_v1, %v297_v0  ;;  %v300_v4 = vld [vmem:[%s236_s23 + $0x18] sm:$0xff]  ;;  %v364_v5 = vld [vmem:[%s245_s13] sm:$0xff]  ;;  %p288_p13 = scmp.lt.s32.totalorder %s621_s26, 3  ;;  %706 = vset.pattern.permute.xlu1 %v888_v40  ;;  %705 = vset.pattern.permute.xlu0 %v889_v43  ;;  %v890_v44 = vmov 3   ;;  %s277_s8 = scalar_lea.vmem [#allocation7], %s1084_s30 }
  0x56   : > { %v365_v6 = vld [vmem:[%s245_s13 + $0x8] sm:$0xff]  ;;  %v366_v8 = vld [vmem:[%s245_s13 + $0x10] sm:$0xff]  ;;  %v367_v9 = vld [vmem:[%s245_s13 + $0x18] sm:$0xff]  ;;  %v304_v10 = vadd.f32 %v300_v4, %v299_v2  ;;  %s448_s25 = sshll.u32 %s277_s8, 4  ;;  %s638_s5 = sshll.u32 %s942_s19, 9  ;;  %s1138_s25 = int_to_ptr.vmem [resolvable:$true] %s448_s25 }
  0x57   : > { %v368_v7 = vadd.f32 %v365_v6, %v364_v5  ;;  %302 = vadd.xlane.f32.xlu0 %v301_v3  ;;  %v371_v11 = vadd.f32 %v367_v9, %v366_v8  ;;  %s1257_s26 = smov (!%p288_p13, %s621_s26), 3  ;;  %s1147_s14 = scalar_lea.hbm %s1238_s3, %s638_s5 }
  0x58   : > { %s622_s20 = sshll.u32 %s1257_s26, 3  ;;  %s429_s11 = scalar_lea.sflag [#allocation4], %s1081_s10 }
  0x59   : > { %369 = vadd.xlane.f32.xlu1 %v368_v7  ;;  %s291_s9 = scalar_lea.vmem %s1237_s2, %s622_s20  ;;  %s780_s23 = scalar_lea.vmem %s1138_s25, 512 }
  0x5a   : > { %v295_v41 = vld [vmem:[%s291_s9] sm:$0xff]  ;;  %v296_v42 = vld [vmem:[%s291_s9 + $0x8] sm:$0xff]  ;;  %p781_p1 = scmp.ne.s32.totalorder %s1138_s25, %s780_s23  ;;  %p1249_p12 = scmp.ne.s32.totalorder %s1244_s27, 0 }
  0x5b   : > { %305 = vadd.xlane.f32.xlu0 %v304_v10  ;;  %s892_s29 = smov [#allocation7]  }
  0x5c   : > { %p782_p10 = pnand %p781_p1, %p1249_p12  ;;  %s784_s13 = sshll.u32 %s892_s29, 4  ;;  %s785_s13 = int_to_ptr.vmem [resolvable:$false] %s784_s13 }
  0x5d   : > { %372 = vadd.xlane.f32.xlu1 %v371_v11  ;;  %s786_s26 = scalar_lea.vmem %s785_s13, 1024  ;;  %p787_p7 = scmp.lt.s32.totalorder %s1138_s25, %s785_s13 }
  0x5e   : > { %p783_p5 = pneg %p782_p10  ;;  %p788_p9 = scmp.lt.s32.totalorder %s786_s26, %s780_s23 }
  0x60   : > { %p789_p11 = por %p788_p9, %p787_p7 }
  0x62   : > { %p790_p3 = pnand %p789_p11, %p783_p5 }
  0xe4   : > { %v303_v12 = vpop.xlane.xlu0 %302 }
  0xe5   : > { %v308_v13 = vmul.f32 0.00390625, %v303_v12 }
  0xe6   : > { %v370_v14 = vpop.xlane.xlu1 %369 }
  0xe7   : > { %v374_v15 = vmul.f32 0.00390625, %v370_v14  ;;  %v1098_v16 = vsub.f32 %v297_v0, %v308_v13  ;;  %v1100_v17 = vsub.f32 %v298_v1, %v308_v13  ;;  %v891_v0 = vmov 2  }
  0xe8   : > { %v306_v18 = vpop.xlane.xlu0 %305 }
  0xe9   : > { %v1102_v19 = vsub.f32 %v364_v5, %v374_v15  ;;  %v1104_v20 = vsub.f32 %v365_v6, %v374_v15  ;;  %v309_v21 = vmul.f32 0.00390625, %v306_v18  ;;  %v314_v22 = vmul.f32 %v1098_v16, %v1098_v16 }
  0xea   : > { %v315_v23 = vmul.f32 %v1100_v17, %v1100_v17  ;;  %v373_v24 = vpop.xlane.xlu1 %372 }
  0xeb   : > { %v375_v25 = vmul.f32 0.00390625, %v373_v24  ;;  %v380_v26 = vmul.f32 %v1102_v19, %v1102_v19  ;;  %v381_v27 = vmul.f32 %v1104_v20, %v1104_v20  ;;  %v1114_v28 = vsub.f32 %v299_v2, %v309_v21 }
  0xec   : > { %v1116_v29 = vsub.f32 %v300_v4, %v309_v21  ;;  %v318_v30 = vadd.f32 %v315_v23, %v314_v22 }
  0xed   : > { %v1118_v31 = vsub.f32 %v366_v8, %v375_v25  ;;  %v1120_v32 = vsub.f32 %v367_v9, %v375_v25  ;;  %v316_v33 = vmul.f32 %v1114_v28, %v1114_v28  ;;  %v384_v35 = vadd.f32 %v381_v27, %v380_v26 }
  0xee   : > { %319 = vadd.xlane.f32.xlu0 %v318_v30  ;;  %v317_v34 = vmul.f32 %v1116_v29, %v1116_v29 }
  0xef   : > { %v382_v36 = vmul.f32 %v1118_v31, %v1118_v31  ;;  %v383_v37 = vmul.f32 %v1120_v32, %v1120_v32 }
  0xf0   : > { %v321_v38 = vadd.f32 %v317_v34, %v316_v33 }
  0xf1   : > { %v387_v39 = vadd.f32 %v383_v37, %v382_v36 }
  0xf2   : > { %322 = vadd.xlane.f32.xlu1 %v321_v38  ;;  %385 = vadd.xlane.f32.xlu0 %v384_v35 }
  0xf6   : > { %388 = vadd.xlane.f32.xlu1 %v387_v39 }
 0x107   : > { %348 = vperm.xlu1 %706, %v295_v41  }
 0x10b   : > { %353 = vperm.xlu1 %706, %v296_v42  }
 0x10f   : > { %707 = vset.pattern.permute.xlu1 %v890_v44 }
 0x110   : > { %413 = vperm.xlu1 %707, %v295_v41  }
 0x114   : > { %708 = vset.pattern.permute.xlu1 %v889_v43 }
 0x17b   : > { %v320_v45 = vpop.xlane.xlu0 %319 }
 0x17c   : > { %v324_v46 = vmul.f32 0.00390625, %v320_v45 }
 0x17e   : > { %v326_v47 = vadd.f32 1e-05, %v324_v46 }
 0x17f   : > { %v323_v48 = vpop.xlane.xlu1 %322  ;;  %v386_v49 = vpop.xlane.xlu0 %385 }
 0x180   : > { %712 = vrsqrt.f32 %v326_v47  ;;  %v325_v50 = vmul.f32 0.00390625, %v323_v48  ;;  %v390_v51 = vmul.f32 0.00390625, %v386_v49 }
 0x182   : > { %v327_v52 = vadd.f32 1e-05, %v325_v50  ;;  %v392_v53 = vadd.f32 1e-05, %v390_v51 }
 0x183   : > { %v389_v54 = vpop.xlane.xlu1 %388 }
 0x184   : > { %714 = vrsqrt.f32 %v327_v52  ;;  %v391_v55 = vmul.f32 0.00390625, %v389_v54 }
 0x185   : > { %716 = vrsqrt.f32 %v392_v53 }
 0x186   : > { %v393_v56 = vadd.f32 1e-05, %v391_v55 }
 0x187   : > { %v349_v2 = vpop.permute.xlu1 %348 }
 0x188   : > { %718 = vrsqrt.f32 %v393_v56 }
 0x18a   : > { %v713_v57 = vpop.eup %712 }
 0x18b   : > { %v330_v58 = vmul.f32 %v713_v57, %v295_v41  ;;  %v354_v3 = vpop.permute.xlu1 %353 }
 0x18d   : > { %334 = vperm.xlu0 %705, %v330_v58  }
 0x18e   : > { %v715_v59 = vpop.eup %714 }
 0x18f   : > { %v717_v60 = vpop.eup %716  ;;  %v331_v61 = vmul.f32 %v715_v59, %v296_v42  ;;  %v414_v4 = vpop.permute.xlu1 %413 }
 0x190   : > { %v396_v62 = vmul.f32 %v717_v60, %v295_v41 }
 0x191   : > { %339 = vperm.xlu1 %708, %v331_v61   ;;  %711 = vset.pattern.permute.xlu0 %v890_v44 }
 0x192   : > { %v719_v63 = vpop.eup %718 }
 0x193   : > { %v397_v1 = vmul.f32 %v719_v63, %v296_v42 }
 0x195   : > { %709 = vset.pattern.permute.xlu1 %v891_v0 }
 0x196   : > { %400 = vperm.xlu1 %709, %v396_v62  }
 0x19a   : > { %405 = vperm.xlu1 %709, %v397_v1  }
 0x19e   : > { %710 = vset.pattern.permute.xlu1 %v890_v44 }
 0x19f   : > { %417 = vperm.xlu1 %710, %v296_v42  }
 0x20c   : > { %v335_v5 = vpop.permute.xlu0 %334 }
 0x20d   : > { %v342_v6 = vmul.f32 %v335_v5, %v1098_v16  ;;  %v343_v7 = vmul.f32 %v335_v5, %v1100_v17 }
 0x20f   : > { %v356_v8 = vadd.f32 %v349_v2, %v342_v6  ;;  %v357_v9 = vadd.f32 %v349_v2, %v343_v7 }
 0x210   : > { %v340_v10 = vpop.permute.xlu1 %339 }
 0x211   : > { %360 = vst [vmem:[%s277_s8] sm:$0xff] %v356_v8  ;;  %361 = vst [vmem:[%s277_s8 + $0x8] sm:$0xff] %v357_v9  ;;  %v344_v11 = vmul.f32 %v340_v10, %v1114_v28  ;;  %v345_v12 = vmul.f32 %v340_v10, %v1116_v29 }
 0x213   : > { %v358_v13 = vadd.f32 %v354_v3, %v344_v11  ;;  %v359_v14 = vadd.f32 %v354_v3, %v345_v12 }
 0x215   : > { %362 = vst [vmem:[%s277_s8 + $0x10] sm:$0xff] %v358_v13  ;;  %363 = vst [vmem:[%s277_s8 + $0x18] sm:$0xff] %v359_v14  ;;  %v401_v15 = vpop.permute.xlu1 %400 }
 0x216   : > { %v408_v16 = vmul.f32 %v401_v15, %v1102_v19  ;;  %v409_v17 = vmul.f32 %v401_v15, %v1104_v20 }
 0x217   : > { %793 = shalt.err (!%p790_p3)
}
 0x218   : > { %s794_s20 = scalar_lea.hbm %s1147_s14, 512  ;;  %s798_s9 = scalar_lea.hbm %s1238_s3, 1024 }
 0x219   : > { %p795_p8 = scmp.ne.s32.totalorder %s1147_s14, %s794_s20  ;;  %p799_p4 = scmp.lt.u32.totalorder %s1147_s14, %s1238_s3 }
 0x21a   : > { %p800_p6 = scmp.lt.u32.totalorder %s798_s9, %s794_s20  ;;  %p802_p1 = scmp.lt.u32.totalorder %s794_s20, %s1147_s14 }
 0x21b   : > { %p796_p0 = pnand %p795_p8, %p1249_p12 }
 0x21c   : > { %p801_p13 = por %p800_p6, %p799_p4 }
 0x21d   : > { %p797_p2 = pneg %p796_p0 }
 0x21e   : > { %p803_p10 = por %p802_p1, %p801_p13 }
 0x220   : > { %p804_p5 = pnand %p803_p10, %p797_p2 }
 0x222   : > { %807 = shalt.err (!%p804_p5)
}
 0x223   : > { %s893_s12 = smov 256   ;;  %s894_s23 = smov 16   ;;  %v420_v18 = vadd.f32 %v414_v4, %v408_v16  ;;  %v421_v19 = vadd.f32 %v414_v4, %v409_v17  ;;  %v406_v20 = vpop.permute.xlu1 %405 }
 0x224   : > { %645 = dma.vmem_to_hbm [thread:$0]  (%p1249_p12), %s1138_s25, 512, %s1147_s14, %s429_s11, %s893_s12, %s893_s12, %s894_s23   ;;  %v410_v21 = vmul.f32 %v406_v20, %v1118_v31  ;;  %v411_v22 = vmul.f32 %v406_v20, %v1120_v32 }
 0x225   : > { %s284_s29 = scalar_lea.vmem [#allocation8], %s1084_s30  ;;  %s1188_s30 = scalar_lea.hbm %s1239_s4, %s638_s5 }
 0x226   : > { %424 = vst [vmem:[%s284_s29] sm:$0xff] %v420_v18  ;;  %425 = vst [vmem:[%s284_s29 + $0x8] sm:$0xff] %v421_v19  ;;  %s465_s13 = sshll.u32 %s284_s29, 4  ;;  %s434_s11 = scalar_lea.sflag [#allocation9], %s1081_s10  ;;  %s1181_s13 = int_to_ptr.vmem [resolvable:$true] %s465_s13 }
 0x227   : > { %v418_v23 = vpop.permute.xlu1 %417  ;;  %s808_s26 = scalar_lea.vmem %s1181_s13, 512  ;;  %s895_s20 = smov [#allocation8]  }
 0x228   : > { %v422_v24 = vadd.f32 %v418_v23, %v410_v21  ;;  %v423_v25 = vadd.f32 %v418_v23, %v411_v22  ;;  %p809_p7 = scmp.ne.s32.totalorder %s1181_s13, %s808_s26  ;;  %s812_s22 = sshll.u32 %s895_s20, 4  ;;  %s813_s22 = int_to_ptr.vmem [resolvable:$false] %s812_s22 }
 0x229   : > { %s814_s6 = scalar_lea.vmem %s813_s22, 1024  ;;  %p815_p3 = scmp.lt.s32.totalorder %s1181_s13, %s813_s22 }
 0x22a   : > { %426 = vst [vmem:[%s284_s29 + $0x10] sm:$0xff] %v422_v24  ;;  %427 = vst [vmem:[%s284_s29 + $0x18] sm:$0xff] %v423_v25  ;;  %p810_p9 = pnand %p809_p7, %p1249_p12  ;;  %p816_p8 = scmp.lt.s32.totalorder %s814_s6, %s808_s26 }
 0x22c   : > { %p811_p11 = pneg %p810_p9  ;;  %p817_p0 = por %p816_p8, %p815_p3 }
 0x22e   : > { %p818_p2 = pnand %p817_p0, %p811_p11 }
 0x230   : > { %821 = shalt.err (!%p818_p2)
}
 0x231   : > { %s822_s19 = scalar_lea.hbm %s1188_s30, 512  ;;  %s826_s8 = scalar_lea.hbm %s1239_s4, 1024 }
 0x232   : > { %p823_p4 = scmp.ne.s32.totalorder %s1188_s30, %s822_s19  ;;  %p827_p1 = scmp.lt.u32.totalorder %s1188_s30, %s1239_s4 }
 0x233   : > { %p828_p10 = scmp.lt.u32.totalorder %s826_s8, %s822_s19  ;;  %p830_p7 = scmp.lt.u32.totalorder %s822_s19, %s1188_s30 }
 0x234   : > { %p824_p6 = pnand %p823_p4, %p1249_p12 }
 0x235   : > { %p829_p5 = por %p828_p10, %p827_p1 }
 0x236   : > { %p825_p13 = pneg %p824_p6 }
 0x237   : > { %p831_p9 = por %p830_p7, %p829_p5 }
 0x239   : > { %p832_p11 = pnand %p831_p9, %p825_p13 }
 0x23b   : > { %835 = shalt.err (!%p832_p11)
}
 0x23c   : > { %646 = dma.vmem_to_hbm [thread:$0]  (%p1249_p12), %s1181_s13, 512, %s1188_s30, %s434_s11, %s893_s12, %s893_s12, %s894_s23  }
 0x23d PF: > { %s480_s25 = sand.u32 1, %s870_s15   ;;  %p1250_p3 = scmp.ne.s32.totalorder %s1245_s28, 0 }
 0x23e   : > { %p1251_p8 = scmp.ge.s32.totalorder %s882_s18, 2  ;;  %s481_s14 = scalar_lea.sflag [#allocation4], %s480_s25 }
 0x240   : > { %p657_p0 = pnand %p1251_p8, %p1250_p3 }
 0x242   : > { %861 = dma.done.wait (!%p657_p0), %s481_s14, 512  }
 0x243   : > { %863 = vsyncadd (!%p657_p0), %s481_s14, 4294966784  ;;  %s490_s27 = scalar_lea.sflag [#allocation9], %s480_s25 }
 0x244   : > { %865 = dma.done.wait (!%p657_p0), %s490_s27, 512  }
 0x245   : > { %867 = vsyncadd (!%p657_p0), %s490_s27, 4294966784  ;;  %p24_p12 = scmp.ge.s32.totalorder %s946_s21, 4   ;;  %s1252_s15 = smov %s874_s16 }
 0x246   : > { %s1253_s16 = smov %s878_s17  ;;  %s1254_s17 = smov %s958_s24 }
 0x247   : > { %s1255_s18 = smov %s946_s21  ;;  %26 = sbr.rel (!%p24_p12) target bundleno = 9 (0x9), region = 110 }
 0x24e   :  { %495 = vsyncpa [#allocation3], 1 }
 0x24f   :  { %497 = vsyncpa [#allocation3 + $0x1], 1 }
 0x250   :  { %498 = vsyncpa [#allocation6], 1 }
 0x251   :  { %500 = vsyncpa [#allocation6 + $0x1], 1 }
 0x252   :  { %501 = vsyncpa [#allocation4], 1 }
 0x253   :  { %503 = vsyncpa [#allocation4 + $0x1], 1 }
 0x254   :  { %504 = vsyncpa [#allocation9], 1 }
 0x255   :  { %506 = vsyncpa [#allocation9 + $0x1], 1 }

</bundles_post_ra>
